<compile_context>
chip_gen: v6e
topology: v6e:2x2x1
jax: 0.10.0
libtpu: 0.0.40
codegen_flags: <defaults>
</compile_context>

<pallas_src>
import jax
import jax.numpy as jnp
from jax.experimental import pallas as pl
from jax.experimental.pallas import tpu as pltpu

POSE_DIM = 7    # quaternion (4) + translation (3)
HID = 256
OUT = 128


def pose_encoder_kernel(x_ref, w1_ref, b1_ref, w2_ref, b2_ref, o_ref):
    # x_ref: (tm, D_pad) bf16, w1: (D_pad, 256) bf16, b1: (1, 256) f32
    # w2: (256, 128) bf16,     b2: (1, 128) f32,      o_ref: (tm, 128)
    h = jnp.dot(x_ref[...], w1_ref[...],
                preferred_element_type=jnp.float32) + b1_ref[...]
    h = jnp.maximum(h, 0.0).astype(jnp.bfloat16)      # second layer at native MXU rate
    y = jnp.dot(h, w2_ref[...],
                preferred_element_type=jnp.float32) + b2_ref[...]
    o_ref[...] = jnp.maximum(y, 0.0).astype(o_ref.dtype)


def _round_up(v, m):
    return ((v + m - 1) // m) * m


def pose_encoder(x, w1, b1, w2, b2, *, tm=512, out_dtype=jnp.bfloat16):
    """x: (N, pose_dim) -> (N, 128).

    w1: (pose_dim, 256), b1: (256,), w2: (256, 128), b2: (128,)
    (nn.Linear weights already transposed to (in, out)).
    """
    N, D = x.shape
    assert w1.shape[0] == D
    hid, out_dim = w1.shape[1], w2.shape[1]

    # ---- tile selection --------------------------------------------------
    # Big row tiles keep the MXU fed and amortize per-step pipeline overhead,
    # but cap so the grid has at least 2 steps (v7x has 2 TensorCores).
    half_rows = _round_up(pl.cdiv(N, 2), 8)
    tm_eff = max(8, min(tm, half_rows))

    # ---- padding: rows to a tile multiple, pose_dim 7 -> 8 ----------------
    d_pad = _round_up(D, 8)
    n_pad = _round_up(N, tm_eff)

    xb = x.astype(jnp.bfloat16)
    if d_pad != D:
        xb = jnp.pad(xb, ((0, 0), (0, d_pad - D)))
    if n_pad != N:
        xb = jnp.pad(xb, ((0, n_pad - N), (0, 0)))

    # Pre-cast / pad weights once in the wrapper (resident across grid steps).
    w1b = w1.astype(jnp.bfloat16)
    if d_pad != D:
        w1b = jnp.pad(w1b, ((0, d_pad - D), (0, 0)))
    w2b = w2.astype(jnp.bfloat16)
    b1f = b1.reshape(1, hid).astype(jnp.float32)
    b2f = b2.reshape(1, out_dim).astype(jnp.float32)

    grid = (n_pad // tm_eff,)

    out_bytes = jnp.dtype(out_dtype).itemsize
    cost = pl.CostEstimate(
        flops=2 * n_pad * (d_pad * hid + hid * out_dim),
        transcendentals=0,
        bytes_accessed=(n_pad * (d_pad * 2 + out_dim * out_bytes)
                        + (d_pad * hid + hid * out_dim) * 2
                        + (hid + out_dim) * 4),
    )

    out = pl.pallas_call(
        pose_encoder_kernel,
        out_shape=jax.ShapeDtypeStruct((n_pad, out_dim), out_dtype),
        grid_spec=pltpu.PrefetchScalarGridSpec(
            num_scalar_prefetch=0,
            grid=grid,
            in_specs=[
                pl.BlockSpec((tm_eff, d_pad), lambda i: (i, 0)),   # x row tile
                pl.BlockSpec((d_pad, hid), lambda i: (0, 0)),      # W1 (resident)
                pl.BlockSpec((1, hid), lambda i: (0, 0)),          # b1 (resident)
                pl.BlockSpec((hid, out_dim), lambda i: (0, 0)),    # W2 (resident)
                pl.BlockSpec((1, out_dim), lambda i: (0, 0)),      # b2 (resident)
            ],
            out_specs=pl.BlockSpec((tm_eff, out_dim), lambda i: (i, 0)),
        ),
        compiler_params=pltpu.CompilerParams(
            dimension_semantics=("parallel",)),
        cost_estimate=cost,
    )(xb, w1b, b1f, w2b, b2f)

    return out[:N]


def pose_encoder_ref(x, w1, b1, w2, b2, out_dtype=jnp.bfloat16):
    # Same numerics as the kernel: bf16 inputs, f32 accumulation, f32 bias.
    h = jnp.dot(x.astype(jnp.bfloat16), w1.astype(jnp.bfloat16),
                preferred_element_type=jnp.float32) + b1.reshape(1, -1)
    h = jnp.maximum(h, 0.0).astype(jnp.bfloat16)
    y = jnp.dot(h, w2.astype(jnp.bfloat16),
                preferred_element_type=jnp.float32) + b2.reshape(1, -1)
    return jnp.maximum(y, 0.0).astype(out_dtype)


if __name__ == "__main__":
    key = jax.random.PRNGKey(0)
    k_x, k_w1, k_b1, k_w2, k_b2 = jax.random.split(key, 5)

    # Example: batch=2, parts=8 -> N=16 pose vectors of dim 7
    # (PyTorch nn.Linear acts on the last dim; leading dims flattened to N).
    B, P = 2, 8
    N = B * P
    x = jax.random.normal(k_x, (N, POSE_DIM), dtype=jnp.float32)

    # Deterministic parameters (shapes from nn.Linear(pose_dim,256)/(256,128)).
    w1 = jax.random.normal(k_w1, (POSE_DIM, HID), dtype=jnp.float32) * (1.0 / POSE_DIM ** 0.5)
    b1 = jax.random.normal(k_b1, (HID,), dtype=jnp.float32) * 0.01
    w2 = jax.random.normal(k_w2, (HID, OUT), dtype=jnp.float32) * (1.0 / HID ** 0.5)
    b2 = jax.random.normal(k_b2, (OUT,), dtype=jnp.float32) * 0.01

    out = pose_encoder(x, w1, b1, w2, b2)
    out = jax.block_until_ready(out)
    assert out.shape == (N, OUT)

    # Check against a reference with matching bf16-input / f32-accum numerics.
    ref = pose_encoder_ref(x, w1, b1, w2, b2)
    assert jnp.allclose(out.astype(jnp.float32), ref.astype(jnp.float32),
                        atol=1e-2, rtol=1e-2), "mismatch vs bf16-path reference"

    # Sanity check against the pure-f32 PyTorch-equivalent forward (looser tol
    # because inputs/weights run through bf16 on the MXU).
    ref_f32 = jnp.maximum(jnp.maximum(x @ w1 + b1, 0.0) @ w2 + b2, 0.0)
    assert jnp.allclose(out.astype(jnp.float32), ref_f32,
                        atol=5e-2, rtol=5e-2), "mismatch vs f32 reference"

    print("KERNEL_OK")
</pallas_src>

<mosaic_0001>
module attributes {stable_mosaic.version = 11 : i64} {
  func.func @pose_encoder_kernel(%arg0: i32, %arg1: memref<8x8xbf16, #tpu.memory_space<vmem>>, %arg2: memref<8x256xbf16, #tpu.memory_space<vmem>>, %arg3: memref<1x256xf32, #tpu.memory_space<vmem>>, %arg4: memref<256x128xbf16, #tpu.memory_space<vmem>>, %arg5: memref<1x128xf32, #tpu.memory_space<vmem>>, %arg6: memref<8x128xbf16, #tpu.memory_space<vmem>>) attributes {dimension_semantics = [#tpu.dimension_semantics<parallel>], iteration_bounds = array<i64: 2>, scalar_prefetch = 0 : i64, scratch_operands = 0 : i64, tpu.core_type = #tpu.core_type<tc>, window_params = [{transform_indices = @transform_0, window_bounds = array<i64: 8, 8>}, {pipeline_mode = #tpu.pipeline_mode<synchronous>, transform_indices = @transform_1, window_bounds = array<i64: 8, 256>}, {pipeline_mode = #tpu.pipeline_mode<synchronous>, transform_indices = @transform_2, window_bounds = array<i64: 1, 256>}, {pipeline_mode = #tpu.pipeline_mode<synchronous>, transform_indices = @transform_3, window_bounds = array<i64: 256, 128>}, {pipeline_mode = #tpu.pipeline_mode<synchronous>, transform_indices = @transform_4, window_bounds = array<i64: 1, 128>}, {transform_indices = @transform_5, window_bounds = array<i64: 8, 128>}]} {
    %c0 = arith.constant 0 : index
    %c0_0 = arith.constant 0 : index
    %0 = vector.load %arg1[%c0, %c0_0] : memref<8x8xbf16, #tpu.memory_space<vmem>>, vector<8x8xbf16>
    %c0_1 = arith.constant 0 : index
    %c0_2 = arith.constant 0 : index
    %1 = vector.load %arg2[%c0_1, %c0_2] : memref<8x256xbf16, #tpu.memory_space<vmem>>, vector<8x256xbf16>
    %cst = arith.constant dense<0.000000e+00> : vector<8x256xf32>
    %2 = tpu.matmul %0, %1, %cst {dimension_numbers = #tpu.dot_dimension_numbers<[1], [0], [0], [1], [0, 0, 1, 1], [], []>} : vector<8x8xbf16>, vector<8x256xbf16>, vector<8x256xf32> -> vector<8x256xf32>
    %c0_3 = arith.constant 0 : index
    %c0_4 = arith.constant 0 : index
    %3 = vector.load %arg3[%c0_3, %c0_4] : memref<1x256xf32, #tpu.memory_space<vmem>>, vector<1x256xf32>
    %4 = vector.broadcast %3 : vector<1x256xf32> to vector<8x256xf32>
    %5 = arith.addf %2, %4 : vector<8x256xf32>
    %cst_5 = arith.constant 0.000000e+00 : f32
    %6 = vector.broadcast %cst_5 : f32 to vector<8x256xf32>
    %7 = arith.maximumf %5, %6 : vector<8x256xf32>
    %8 = arith.truncf %7 : vector<8x256xf32> to vector<8x256xbf16>
    %c0_6 = arith.constant 0 : index
    %c0_7 = arith.constant 0 : index
    %9 = vector.load %arg4[%c0_6, %c0_7] : memref<256x128xbf16, #tpu.memory_space<vmem>>, vector<256x128xbf16>
    %cst_8 = arith.constant dense<0.000000e+00> : vector<8x128xf32>
    %10 = tpu.matmul %8, %9, %cst_8 {dimension_numbers = #tpu.dot_dimension_numbers<[1], [0], [0], [1], [0, 0, 1, 1], [], []>} : vector<8x256xbf16>, vector<256x128xbf16>, vector<8x128xf32> -> vector<8x128xf32>
    %c0_9 = arith.constant 0 : index
    %c0_10 = arith.constant 0 : index
    %11 = vector.load %arg5[%c0_9, %c0_10] : memref<1x128xf32, #tpu.memory_space<vmem>>, vector<1x128xf32>
    %12 = vector.broadcast %11 : vector<1x128xf32> to vector<8x128xf32>
    %13 = arith.addf %10, %12 : vector<8x128xf32>
    %cst_11 = arith.constant 0.000000e+00 : f32
    %14 = vector.broadcast %cst_11 : f32 to vector<8x128xf32>
    %15 = arith.maximumf %13, %14 : vector<8x128xf32>
    %16 = arith.truncf %15 : vector<8x128xf32> to vector<8x128xbf16>
    %c0_12 = arith.constant 0 : index
    %c0_13 = arith.constant 0 : index
    %17 = vector.load %arg6[%c0_12, %c0_13] : memref<8x128xbf16, #tpu.memory_space<vmem>>, vector<8x128xbf16>
    tpu.vector_store %arg6[%c0_12, %c0_13], %16 {strides = array<i32>} : memref<8x128xbf16, #tpu.memory_space<vmem>>, vector<8x128xbf16>,
    return
  }
  func.func @transform_0(%arg0: i32) -> (i32, i32) {
    %c0_i32 = arith.constant 0 : i32
    %c0_i32_0 = arith.constant 0 : i32
    return %arg0, %c0_i32 : i32, i32
  }
  func.func @transform_1(%arg0: i32) -> (i32, i32) {
    %c0_i32 = arith.constant 0 : i32
    %c0_i32_0 = arith.constant 0 : i32
    %c0_i32_1 = arith.constant 0 : i32
    return %c0_i32, %c0_i32_0 : i32, i32
  }
  func.func @transform_2(%arg0: i32) -> (i32, i32) {
    %c0_i32 = arith.constant 0 : i32
    %c0_i32_0 = arith.constant 0 : i32
    %c0_i32_1 = arith.constant 0 : i32
    return %c0_i32, %c0_i32_0 : i32, i32
  }
  func.func @transform_3(%arg0: i32) -> (i32, i32) {
    %c0_i32 = arith.constant 0 : i32
    %c0_i32_0 = arith.constant 0 : i32
    %c0_i32_1 = arith.constant 0 : i32
    return %c0_i32, %c0_i32_0 : i32, i32
  }
  func.func @transform_4(%arg0: i32) -> (i32, i32) {
    %c0_i32 = arith.constant 0 : i32
    %c0_i32_0 = arith.constant 0 : i32
    %c0_i32_1 = arith.constant 0 : i32
    return %c0_i32, %c0_i32_0 : i32, i32
  }
  func.func @transform_5(%arg0: i32) -> (i32, i32) {
    %c0_i32 = arith.constant 0 : i32
    %c0_i32_0 = arith.constant 0 : i32
    return %arg0, %c0_i32 : i32, i32
  }
}

</mosaic_0001>

<bundles_post_ra>
// kernel: tpu_custom_call.1
= control target key start
LH: loop header
LB: loop body
LE: loop exit
PB: predicated region body
PF: predicated region fallthrough
CT: control target
= control target key end

     0   :  { %10 = vsyncpa [#allocation3], 0  ;;  %s941_s0 = inlined_call_operand.vmem [shape: bf16[16,8], index: 0, kind: input, shape index: {}]   ;;  %s942_s1 = inlined_call_operand.vmem [shape: bf16[8,256], index: 1, kind: input, shape index: {}]   ;;  %s943_s2 = inlined_call_operand.vmem [shape: f32[1,256], index: 2, kind: input, shape index: {}]   ;;  %s944_s3 = inlined_call_operand.hbm [shape: bf16[256,128], index: 3, kind: input, shape index: {}]   ;;  %s945_s4 = inlined_call_operand.vmem [shape: f32[1,128], index: 4, kind: input, shape index: {}]   ;;  %s946_s5 = inlined_call_operand.hbm [shape: bf16[16,128], index: 5, kind: output, shape index: {}]  }
   0x1   :  { %11 = vsyncpa [#allocation4], 0 }
   0x2   :  { %13 = vsyncpa [#allocation4 + $0x1], 0  ;;  %s827_s18 = smov 0   ;;  %s829_s19 = smov 0  }
   0x3   :  { %s831_s20 = smov 0   ;;  %s833_s21 = smov 0  }
   0x4 LB: > { %s848_s22 = sadd.s32 4294967295, %s790_s21   ;;  %s574_s23 = sadd.s32 4294967294, %s790_s21   ;;  %s790_s21 = sphi %s833_s21, %s954_s21   ;;  %s786_s20 = sphi %s831_s20, %s953_s20   ;;  %s782_s19 = sphi %s829_s19, %s952_s19   ;;  %s778_s18 = sphi %s827_s18, %s951_s18  }
   0x5   : > { %s852_s24 = sadd.s32 1, %s790_s21   ;;  %s136_s25 = sadd.s32 1, %s786_s20 }
   0x6   : > { %s133_s26 = ssub.s32 %s790_s21, %s852_s24  ;;  %p146_p0 = scmp.ne.s32.totalorder %s786_s20, %s782_s19 }
   0x7   : > { %p134_p1 = scmp.eq.s32.totalorder %s133_s26, 0  ;;  %p147_p2 = scmp.eq.s32.totalorder %s848_s22, 1 }
   0x8   : > { %p152_p3 = scmp.ne.s32.totalorder %s782_s19, %s778_s18  ;;  %p153_p4 = scmp.eq.s32.totalorder %s574_s23, 1 }
   0x9   : > { %s863_s27 = scalar_select %p134_p1, %s786_s20, %s136_s25  }
   0xa   : > { %p865_p5 = por %p147_p2, %p146_p0  ;;  %p869_p6 = por %p153_p4, %p152_p3 }
   0xb   : > { %p575_p7 = scmp.ge.s32.totalorder %s790_s21, 1  ;;  %p160_p8 = scmp.lt.s32.totalorder %s790_s21, 3 }
   0xc   : > { %s948_s29 = scalar_select %p869_p6, 1, 0 }
   0xd   : > { %p643_p9 = scmp.eq.s32.totalorder %s848_s22, 0  ;;  %p876_p10 = pnand %p575_p7, %p160_p8 }
   0xe   : > { %s792_s6 = smov [#allocation2]  }
   0xf   : > { %s178_s7 = sshll.u32 %s792_s6, 4  ;;  %p635_p11 = pneg %p876_p10  ;;  %s179_s7 = int_to_ptr.vmem [resolvable:$true] %s178_s7 }
  0x10   : > { %s711_s8 = scalar_lea.vmem %s179_s7, 2048  ;;  %p719_p3 = scmp.lt.s32.totalorder %s179_s7, %s179_s7 }
  0x11   : > { %p636_p12 = pnand %p643_p9, %p635_p11  ;;  %p712_p0 = scmp.ne.s32.totalorder %s179_s7, %s711_s8 }
  0x12   : > { %p720_p4 = scmp.lt.s32.totalorder %s711_s8, %s711_s8 }
  0x13   : > { %p702_p13 = pneg %p636_p12 }
  0x14   : > { %p721_p6 = por %p720_p4, %p719_p3 }
  0x15   : > { %p714_p1 = pnand %p712_p0, %p702_p13 }
  0x17   : > { %p715_p2 = pneg %p714_p1 }
  0x19   : > { %p722_p7 = pnand %p721_p6, %p715_p2 }
  0x1b   : > { %725 = shalt.err (!%p722_p7)
}
  0x1c   : > { %s793_s9 = smov 64   ;;  %s794_s10 = smov 4  }
  0x1d   : > { %638 = dma.hbm_to_vmem [thread:$0]  (!%p636_p12), %s944_s3, 2048, %s179_s7, [#allocation3], %s793_s9, %s793_s9, %s794_s10  }
  0x1e   : > { %204 = sbr.rel (%p876_p10) target bundleno = 461 (0x1cd), region = 40 }
  0x23   : > { %769 = dma.done.wait (%p643_p9), [#allocation3], 2048  }
  0x24   : > { %771 = vsyncadd (%p643_p9), [#allocation3], 4294965248  ;;  %p231_p8 = scmp.lt.s32.totalorder %s848_s22, 1  ;;  %v795_v0 = vmov 0   ;;  %v237_v1 = vld [vmem:[%s942_s1] sm:$0xff]  ;;  %vm259_vm0 = vcmask 1043456   ;;  %v240_v22 = vlaneseq }
  0x25   : > { %298 = vmatprep.mubr.bf16.mxu0 %v795_v0  ;;  %v583_v2 = vcombine.high %v237_v1, %v237_v1  ;;  %v582_v3 = vcombine.low %v237_v1, %v237_v1  ;;  %v684_v4 = vld [vmem:[#allocation2 + $0x78] sm:$0xff]   ;;  %v686_v8 = vld [vmem:[#allocation2 + $0x70] sm:$0xff]   ;;  %vm255_vm1 = vcmask 64512   ;;  %v688_v10 = vld [vmem:[#allocation2 + $0x68] sm:$0xff]   ;;  %s228_s6 = sand.u32 1, %s782_s19   ;;  %s604_s10 = sshll.u32 %s848_s22, 6 }
  0x26   : > { %s232_s13 = scalar_select %p231_p8, %s848_s22, 1  ;;  %v685_v6 = vld [vmem:[#allocation2 + $0x38] sm:$0xff]   ;;  %607 = vmatprep.subr.bf16.mxu1 %v684_v4  ;;  %v687_v9 = vld [vmem:[#allocation2 + $0x30] sm:$0xff]   ;;  %v689_v11 = vld [vmem:[#allocation2 + $0x28] sm:$0xff]   ;;  %v241_v23 = vshrl.u32 %v240_v22, 7 }
  0x27   : > { %584 = vmatprep.subr.msk.bf16.mxu0 %vm259_vm0, %v583_v2  ;;  %v261_v7 = vsel %vm259_vm0, %v582_v3, 0  ;;  %608 = vmatpush3.bf16.msra.mxu1 %v685_v6  ;;  %v690_v12 = vld [vmem:[#allocation2 + $0x60] sm:$0xff]   ;;  %v692_v14 = vld [vmem:[#allocation2 + $0x58] sm:$0xff]   ;;  %v694_v16 = vld [vmem:[#allocation2 + $0x50] sm:$0xff]   ;;  %s580_s7 = sshll.u32 %s228_s6, 2  ;;  %s501_s15 = scalar_lea.hbm %s946_s5, %s604_s10 }
  0x28   : > { %s581_s14 = sshll.u32 %s232_s13, 2  ;;  %281 = vmatpush1.bf16.msra.mxu0 %v261_v7  ;;  %609 = vmatprep.subr.bf16.mxu1 %v686_v8  ;;  %v691_v13 = vld [vmem:[#allocation2 + $0x20] sm:$0xff]   ;;  %v693_v15 = vld [vmem:[#allocation2 + $0x18] sm:$0xff]   ;;  %v695_v17 = vld [vmem:[#allocation2 + $0x10] sm:$0xff]   ;;  %v242_v24 = vsub.s32 0, %v241_v23  ;;  %v246_v26 = vsub.s32 1, %v241_v23 }
  0x29   : > { %s234_s17 = scalar_lea.vmem %s941_s0, %s581_s14  ;;  %v696_v18 = vld [vmem:[#allocation2 + $0x48] sm:$0xff]   ;;  %v698_v20 = vld [vmem:[#allocation2 + $0x40] sm:$0xff]   ;;  %s230_s11 = scalar_lea.vmem [#allocation5], %s580_s7 }
  0x2a   : > { %v236_v5 = vld [vmem:[%s234_s17] sm:$0xf]  ;;  %v697_v19 = vld [vmem:[#allocation2 + $0x8] sm:$0xff]   ;;  %s503_s12 = sshll.u32 %s230_s11, 4  ;;  %s490_s16 = scalar_lea.sflag [#allocation4], %s228_s6  ;;  %s504_s12 = int_to_ptr.vmem [resolvable:$true] %s503_s12 }
  0x2b   : > { %585 = vmatmul.mubr.msk.bf16.vlgmr.msra.gmra.mxu0 %vm255_vm1, %v236_v5  ;;  %610 = vmatpush3.bf16.msra.mxu1 %v687_v9  ;;  %v699_v21 = vld [vmem:[#allocation2] sm:$0xff]   ;;  %s726_s17 = scalar_lea.vmem %s504_s12, 64  ;;  %s796_s23 = smov [#allocation5]  }
  0x2c   : > { %611 = vmatprep.subr.bf16.mxu1 %v688_v10  ;;  %v238_v25 = vld [vmem:[%s943_s2] sm:$0x3]  ;;  %p727_p6 = scmp.ne.s32.totalorder %s504_s12, %s726_s17  ;;  %s730_s25 = sshll.u32 %s796_s23, 4  ;;  %s731_s25 = int_to_ptr.vmem [resolvable:$false] %s730_s25 }
  0x2d   : > { %v243_v27 = vrot.slane %v238_v25, %v242_v24  ;;  %v247_v28 = vrot.slane %v238_v25, %v246_v26  ;;  %v586_v40 = vld [vmem:[%s945_s4] ss:$0 sm:$0xff]  ;;  %s732_s22 = scalar_lea.vmem %s731_s25, 128  ;;  %p733_p11 = scmp.lt.s32.totalorder %s504_s12, %s731_s25 }
  0x2e   : > { %p728_p9 = pnand %p727_p6, %p865_p5  ;;  %p734_p12 = scmp.lt.s32.totalorder %s732_s22, %s726_s17 }
  0x2f   : > { %612 = vmatpush3.bf16.msra.mxu1 %v689_v11 }
  0x30   : > { %613 = vmatprep.subr.bf16.mxu1 %v690_v12  ;;  %p729_p10 = pneg %p728_p9  ;;  %p735_p13 = por %p734_p12, %p733_p11 }
  0x32   : > { %p736_p0 = pnand %p735_p13, %p729_p10 }
  0x33   : > { %614 = vmatpush3.bf16.msra.mxu1 %v691_v13 }
  0x34   : > { %615 = vmatprep.subr.bf16.mxu1 %v692_v14 }
  0x37   : > { %616 = vmatpush3.bf16.msra.mxu1 %v693_v15 }
  0x38   : > { %617 = vmatprep.subr.bf16.mxu1 %v694_v16 }
  0x3b   : > { %618 = vmatpush3.bf16.msra.mxu1 %v695_v17 }
  0x3c   : > { %619 = vmatprep.subr.bf16.mxu1 %v696_v18 }
  0x3f   : > { %620 = vmatpush3.bf16.msra.mxu1 %v697_v19 }
  0x40   : > { %621 = vmatprep.subr.bf16.mxu1 %v698_v20 }
  0x43   : > { %622 = vmatpush3.bf16.msra.mxu1 %v699_v21 }
  0xeb   : > { %v300_v29 = vpop.f32.mrf.mxu0 }
  0xec   : > { %v301_v30 = vadd.f32 %v300_v29, %v243_v27 }
  0xed   : > { %v302_v31 = vpop.f32.mrf.mxu0 }
  0xee   : > { %v303_v32 = vadd.f32 %v302_v31, %v247_v28  ;;  %v307_v33 = vmax.f32 %v301_v30, 0.0 }
  0xef   : > { %v304_v34 = vpop.f32.mrf.mxu0 }
  0xf0   : > { %v308_v35 = vmax.f32 %v303_v32, 0.0  ;;  %v309_v38 = vpack.c.bf16 %v307_v33, %v307_v33 }
  0xf1   : > { %v305_v36 = vpop.f32.mrf.mxu0 }
  0xf2   : > { %v310_v37 = vpack.c.bf16 %v308_v35, %v308_v35 }
  0xf4   : > { %478 = vmatprep.mubr.bf16.mxu1 %v310_v37 }
  0xf5   : > { %479 = vmatmul.mubr.bf16.vlgmr.msra.gmra.mxu1 %v309_v38 }
 0x1b5   : > { %v623_v39 = vpop.f32.mrf.mxu1 }
 0x1b7   : > { %v624_v41 = vpop.f32.mrf.mxu1 }
 0x1b8   : > { %v625_v42 = vadd.f32 %v624_v41, %v623_v39 }
 0x1b9   : > { %v626_v43 = vpop.f32.mrf.mxu1 }
 0x1ba   : > { %v481_v44 = vadd.f32 %v625_v42, %v586_v40 }
 0x1bb   : > { %v627_v45 = vpop.f32.mrf.mxu1 }
 0x1bc   : > { %v486_v46 = vmax.f32 %v481_v44, 0.0 }
 0x1be   : > { %v487_v47 = vpack.c.bf16 %v486_v46, %v486_v46 }
 0x1c0   : > { %488 = vst [vmem:[%s230_s11] sm:$0xf] %v487_v47 }
 0x1c1   : > { %739 = shalt.err (!%p736_p0)
}
 0x1c2   : > { %s740_s26 = scalar_lea.hbm %s501_s15, 64  ;;  %s744_s7 = scalar_lea.hbm %s946_s5, 128 }
 0x1c3   : > { %p741_p1 = scmp.ne.s32.totalorder %s501_s15, %s740_s26  ;;  %p745_p4 = scmp.lt.s32.totalorder %s501_s15, %s946_s5 }
 0x1c4   : > { %p746_p7 = scmp.lt.s32.totalorder %s744_s7, %s740_s26 }
 0x1c5   : > { %p742_p2 = pnand %p741_p1, %p865_p5 }
 0x1c6   : > { %p747_p8 = por %p746_p7, %p745_p4 }
 0x1c7   : > { %p743_p3 = pneg %p742_p2 }
 0x1c9   : > { %p748_p6 = pnand %p747_p8, %p743_p3 }
 0x1cb   : > { %751 = shalt.err (!%p748_p6)
}
 0x1cc   : > { %633 = dma.vmem_to_hbm [thread:$0]  (%p865_p5), %s504_s12, 64, %s501_s15, %s490_s16  }
 0x1cd PF: > { %p645_p9 = scmp.ge.s32.totalorder %s790_s21, 2  ;;  %s515_s10 = sand.u32 1, %s778_s18  }
 0x1ce   : > { %p950_p10 = scmp.ne.s32.totalorder %s948_s29, 0  ;;  %s516_s11 = scalar_lea.sflag [#allocation4], %s515_s10 }
 0x1d0   : > { %p640_p11 = pnand %p645_p9, %p950_p10 }
 0x1d2   : > { %p641_p12 = pneg %p640_p11 }
 0x1d4   : > { %773 = dma.done.wait (%p641_p12), %s516_s11, 64  }
 0x1d5   : > { %775 = vsyncadd (%p641_p12), %s516_s11, 4294967232  ;;  %p16_p13 = scmp.ge.s32.totalorder %s852_s24, 4   ;;  %s951_s18 = smov %s782_s19 }
 0x1d6   : > { %s952_s19 = smov %s786_s20  ;;  %s953_s20 = smov %s863_s27 }
 0x1d7   : > { %s954_s21 = smov %s852_s24  ;;  %18 = sbr.rel (!%p16_p13) target bundleno = 4 (0x4), region = 80 }
 0x1dc   :  { %521 = vsyncpa [#allocation3], 1 }
 0x1dd   :  { %523 = vsyncpa [#allocation3 + $0x1], 1 }
 0x1de   :  { %524 = vsyncpa [#allocation4], 1 }
 0x1df   :  { %526 = vsyncpa [#allocation4 + $0x1], 1 }

</bundles_post_ra>
